<compile_context>
chip_gen: v7x
topology: tpu7x:2x2x1
jax: 0.10.0
libtpu: 0.0.40
codegen_flags: <defaults>
</compile_context>

<pallas_src>
import functools

import numpy as np
import jax
import jax.numpy as jnp
from jax.experimental import pallas as pl
from jax.experimental.pallas import tpu as pltpu

NEG_SLOPE = 0.01  # default slope of F.leaky_relu_


def _round_up(x, m):
    return ((x + m - 1) // m) * m


def _mean_pool_agg_kernel(ft_ref, w_ref, b_ref, o_ref, *, inv_n):
    # ft_ref: (TB, N, D) tile of neighbor features (compute dtype)
    # w_ref : (D, D)     pre-transposed weight, i.e. (D_in, D_out) layout
    # b_ref : (1, D)     bias (f32)
    # o_ref : (TB, D)    pooled output tile (f32)
    tb, n, d = ft_ref.shape
    x = ft_ref[...].reshape(tb * n, d)                        # (TB*N, D)

    # One big MXU contraction per tile; canonical (1,0) contraction since the
    # weight was transposed once in the wrapper (no in-kernel weight transpose).
    h = jnp.dot(x, w_ref[...], preferred_element_type=jnp.float32)  # (TB*N, D) f32

    h = h + b_ref[...]                                        # broadcast (1, D)
    h = jnp.where(h >= 0, h, NEG_SLOPE * h)                   # leaky_relu (f32)

    pooled = jnp.sum(h.reshape(tb, n, d), axis=1) * inv_n     # mean over neighbors
    o_ref[...] = pooled.astype(o_ref.dtype)


def mean_pooling_aggregator(ft, weight, bias, *, batch_tile=None,
                            compute_dtype=jnp.bfloat16):
    """MeanPoolingAggregator forward (num_fc=1).

    ft:     (B, N, D)  neighbor features
    weight: (D, D)     nn.Linear weight in PyTorch (D_out, D_in) layout
    bias:   (D,)       nn.Linear bias
    compute_dtype: dtype for the matmul operands (default bf16; pass None to
                   keep ft's dtype). Bias/activation/mean stay in f32.
    Returns (B, D) float32.
    """
    B, N, D = ft.shape
    assert weight.shape == (D, D) and bias.shape == (D,)

    # VMEM budget: ~85% of per-core capacity (v5e/v6e 128 MiB, v7x 64 MiB).
    try:
        vmem_limit = int(pltpu.get_tpu_info().vmem_capacity_bytes * 0.85)
    except Exception:
        vmem_limit = 48 * 1024 * 1024  # safe on every generation

    cb = np.dtype(compute_dtype if compute_dtype is not None else ft.dtype).itemsize

    if batch_tile is None:
        # Target ~2 MiB ft blocks (mem-bound kernels reach ~85% of HBM roofline
        # only at >= ~1 MiB tiles), TB a multiple of 8, without over-tiling tiny B.
        target_bytes = 2 * 1024 * 1024
        tb = max(8, (target_bytes // max(N * D * cb, 1)) // 8 * 8)
        tb = min(tb, _round_up(B, 8))
        if B > 8:
            # Keep >= 2 grid steps so the "parallel" axis can use both v7x TCs.
            tb = min(tb, max(8, (pl.cdiv(B, 2) // 8) * 8))
    else:
        tb = max(8, _round_up(batch_tile, 8))

    # Conservative per-step VMEM estimate; shrink the tile until it fits.
    def _vmem_est(t):
        ft_blk = t * N * D * cb
        return (3 * ft_blk              # double-buffered ft block + in-kernel copy
                + t * N * D * 4         # f32 activations h
                + D * D * cb + D * 4    # weight + bias (single-buffered)
                + 2 * t * D * 4)        # double-buffered f32 output

    while tb > 8 and _vmem_est(tb) > int(0.7 * vmem_limit):
        tb = max(8, (tb // 2) // 8 * 8)
    # TODO(synk): for very large D (weight ~ VMEM) add a K-tile "arbitrary" grid
    # axis with a VMEM f32 accumulator; not needed at these sizes.

    # One-time HBM-side weight transpose -> (D_in, D_out) so the kernel uses the
    # canonical contraction with no per-step relayout.
    wt = weight.T
    if compute_dtype is not None:
        ft_in = ft.astype(compute_dtype)
        wt = wt.astype(compute_dtype)
    else:
        ft_in = ft
    b2d = bias.reshape(1, D).astype(jnp.float32)

    kernel = functools.partial(_mean_pool_agg_kernel, inv_n=1.0 / N)
    grid = (pl.cdiv(B, tb),)  # partial last block: masked output writes, no ft pad

    def _call(single_buffer_invariants):
        if single_buffer_invariants:
            inv = dict(pipeline_mode=pl.Buffered(1))
        else:
            inv = {}
        return pl.pallas_call(
            kernel,
            out_shape=jax.ShapeDtypeStruct((B, D), jnp.float32),
            grid_spec=pltpu.PrefetchScalarGridSpec(
                num_scalar_prefetch=0,
                grid=grid,
                in_specs=[
                    pl.BlockSpec((tb, N, D), lambda b: (b, 0, 0)),
                    pl.BlockSpec((D, D), lambda b: (0, 0), **inv),   # grid-invariant weight
                    pl.BlockSpec((1, D), lambda b: (0, 0), **inv),   # grid-invariant bias
                ],
                out_specs=pl.BlockSpec((tb, D), lambda b: (b, 0)),
            ),
            compiler_params=pltpu.CompilerParams(
                dimension_semantics=("parallel",),
                vmem_limit_bytes=vmem_limit,
            ),
        )(ft_in, wt, b2d)

    try:
        return _call(True)
    except Exception:
        # pl.Buffered(1) not supported on this jax build: fall back to the
        # default (double-buffered) invariant weight/bias — still correct.
        return _call(False)


def _reference(ft, weight, bias):
    h = jnp.einsum("bnd,ed->bne", ft, weight) + bias
    h = jnp.where(h >= 0, h, NEG_SLOPE * h)
    return jnp.mean(h, axis=1)


if __name__ == "__main__":
    key = jax.random.PRNGKey(0)
    k_ft, k_w, k_b = jax.random.split(key, 3)

    B, N, D = 2, 8, 32          # batch, neighbors, input_dim (num_fc=1 -> Linear(D, D))
    ft = jax.random.normal(k_ft, (B, N, D), dtype=jnp.float32)

    # Deterministic parameter init (PyTorch Linear-style uniform range).
    bound = 1.0 / (D ** 0.5)
    weight = jax.random.uniform(k_w, (D, D), jnp.float32, -bound, bound)  # (D_out, D_in)
    bias = jax.random.uniform(k_b, (D,), jnp.float32, -bound, bound)

    ref = _reference(ft, weight, bias)

    # f32 operand path: tight tolerance.
    out_f32 = jax.block_until_ready(
        mean_pooling_aggregator(ft, weight, bias, compute_dtype=None))
    assert out_f32.shape == (B, D)
    assert jnp.allclose(out_f32, ref, atol=1e-5, rtol=1e-5)

    # Default bf16-operand path (halves ft HBM traffic): relaxed tolerance.
    out_bf16 = jax.block_until_ready(mean_pooling_aggregator(ft, weight, bias))
    assert out_bf16.shape == (B, D)
    assert jnp.allclose(out_bf16, ref, atol=3e-2, rtol=3e-2)

    print("KERNEL_OK")
</pallas_src>

<mosaic_0001>
module attributes {stable_mosaic.version = 11 : i64} {
  func.func @_mean_pool_agg_kernel(%arg0: i32, %arg1: memref<8x8x32xf32, #tpu.memory_space<vmem>>, %arg2: memref<32x32xf32, #tpu.memory_space<vmem>>, %arg3: memref<1x32xf32, #tpu.memory_space<vmem>>, %arg4: memref<8x32xf32, #tpu.memory_space<vmem>>) attributes {dimension_semantics = [#tpu.dimension_semantics<parallel>], iteration_bounds = array<i64: 1>, scalar_prefetch = 0 : i64, scratch_operands = 0 : i64, tpu.core_type = #tpu.core_type<tc>, window_params = [{transform_indices = @transform_0, window_bounds = array<i64: 8, 8, 32>}, {pipeline_mode = #tpu.pipeline_mode<synchronous>, transform_indices = @transform_1, window_bounds = array<i64: 32, 32>}, {pipeline_mode = #tpu.pipeline_mode<synchronous>, transform_indices = @transform_2, window_bounds = array<i64: 1, 32>}, {transform_indices = @transform_3, window_bounds = array<i64: 8, 32>}]} {
    %c0 = arith.constant 0 : index
    %c0_0 = arith.constant 0 : index
    %c0_1 = arith.constant 0 : index
    %0 = vector.load %arg1[%c0, %c0_0, %c0_1] : memref<8x8x32xf32, #tpu.memory_space<vmem>>, vector<8x8x32xf32>
    %1 = vector.shape_cast %0 : vector<8x8x32xf32> to vector<64x32xf32>
    %c0_2 = arith.constant 0 : index
    %c0_3 = arith.constant 0 : index
    %2 = vector.load %arg2[%c0_2, %c0_3] : memref<32x32xf32, #tpu.memory_space<vmem>>, vector<32x32xf32>
    %cst = arith.constant dense<0.000000e+00> : vector<64x32xf32>
    %3 = tpu.matmul %1, %2, %cst {dimension_numbers = #tpu.dot_dimension_numbers<[1], [0], [0], [1], [0, 0, 1, 1], [], []>} : vector<64x32xf32>, vector<32x32xf32>, vector<64x32xf32> -> vector<64x32xf32>
    %c0_4 = arith.constant 0 : index
    %c0_5 = arith.constant 0 : index
    %4 = vector.load %arg3[%c0_4, %c0_5] : memref<1x32xf32, #tpu.memory_space<vmem>>, vector<1x32xf32>
    %5 = vector.broadcast %4 : vector<1x32xf32> to vector<64x32xf32>
    %6 = arith.addf %3, %5 : vector<64x32xf32>
    %cst_6 = arith.constant 0.000000e+00 : f32
    %7 = vector.broadcast %cst_6 : f32 to vector<64x32xf32>
    %8 = arith.cmpf oge, %6, %7 : vector<64x32xf32>
    %cst_7 = arith.constant 0.00999999977 : f32
    %9 = vector.broadcast %cst_7 : f32 to vector<64x32xf32>
    %10 = arith.mulf %9, %6 : vector<64x32xf32>
    %11 = arith.select %8, %6, %10 : vector<64x32xi1>, vector<64x32xf32>
    %12 = vector.shape_cast %11 : vector<64x32xf32> to vector<8x8x32xf32>
    %cst_8 = arith.constant dense<0.000000e+00> : vector<8x32xf32>
    %13 = vector.multi_reduction <add>, %12, %cst_8 [1] : vector<8x8x32xf32> to vector<8x32xf32>
    %cst_9 = arith.constant 1.250000e-01 : f32
    %14 = vector.broadcast %cst_9 : f32 to vector<8x32xf32>
    %15 = arith.mulf %13, %14 : vector<8x32xf32>
    %c0_10 = arith.constant 0 : index
    %c0_11 = arith.constant 0 : index
    %16 = vector.load %arg4[%c0_10, %c0_11] : memref<8x32xf32, #tpu.memory_space<vmem>>, vector<8x32xf32>
    tpu.vector_store %arg4[%c0_10, %c0_11], %15 {strides = array<i32>} : memref<8x32xf32, #tpu.memory_space<vmem>>, vector<8x32xf32>,
    return
  }
  func.func @transform_0(%arg0: i32) -> (i32, i32, i32) {
    %c0_i32 = arith.constant 0 : i32
    %c0_i32_0 = arith.constant 0 : i32
    %c0_i32_1 = arith.constant 0 : i32
    return %arg0, %c0_i32, %c0_i32_0 : i32, i32, i32
  }
  func.func @transform_1(%arg0: i32) -> (i32, i32) {
    %c0_i32 = arith.constant 0 : i32
    %c0_i32_0 = arith.constant 0 : i32
    %c0_i32_1 = arith.constant 0 : i32
    return %c0_i32, %c0_i32_0 : i32, i32
  }
  func.func @transform_2(%arg0: i32) -> (i32, i32) {
    %c0_i32 = arith.constant 0 : i32
    %c0_i32_0 = arith.constant 0 : i32
    %c0_i32_1 = arith.constant 0 : i32
    return %c0_i32, %c0_i32_0 : i32, i32
  }
  func.func @transform_3(%arg0: i32) -> (i32, i32) {
    %c0_i32 = arith.constant 0 : i32
    %c0_i32_0 = arith.constant 0 : i32
    return %arg0, %c0_i32 : i32, i32
  }
}

module attributes {stable_mosaic.version = 11 : i64} {
  func.func @_mean_pool_agg_kernel(%arg0: i32, %arg1: memref<8x8x32xf32, #tpu.memory_space<vmem>>, %arg2: memref<32x32xf32, #tpu.memory_space<vmem>>, %arg3: memref<1x32xf32, #tpu.memory_space<vmem>>, %arg4: memref<8x32xf32, #tpu.memory_space<vmem>>) attributes {dimension_semantics = [#tpu.dimension_semantics<parallel>], iteration_bounds = array<i64: 1>, scalar_prefetch = 0 : i64, scratch_operands = 0 : i64, tpu.core_type = #tpu.core_type<tc>, window_params = [{transform_indices = @transform_0, window_bounds = array<i64: 8, 8, 32>}, {pipeline_mode = #tpu.pipeline_mode<synchronous>, transform_indices = @transform_1, window_bounds = array<i64: 32, 32>}, {pipeline_mode = #tpu.pipeline_mode<synchronous>, transform_indices = @transform_2, window_bounds = array<i64: 1, 32>}, {transform_indices = @transform_3, window_bounds = array<i64: 8, 32>}]} {
    %c0 = arith.constant 0 : index
    %c0_0 = arith.constant 0 : index
    %c0_1 = arith.constant 0 : index
    %0 = vector.load %arg1[%c0, %c0_0, %c0_1] : memref<8x8x32xf32, #tpu.memory_space<vmem>>, vector<8x8x32xf32>
    %1 = vector.shape_cast %0 : vector<8x8x32xf32> to vector<64x32xf32>
    %c0_2 = arith.constant 0 : index
    %c0_3 = arith.constant 0 : index
    %2 = vector.load %arg2[%c0_2, %c0_3] : memref<32x32xf32, #tpu.memory_space<vmem>>, vector<32x32xf32>
    %cst = arith.constant dense<0.000000e+00> : vector<64x32xf32>
    %3 = tpu.matmul %1, %2, %cst {dimension_numbers = #tpu.dot_dimension_numbers<[1], [0], [0], [1], [0, 0, 1, 1], [], []>} : vector<64x32xf32>, vector<32x32xf32>, vector<64x32xf32> -> vector<64x32xf32>
    %c0_4 = arith.constant 0 : index
    %c0_5 = arith.constant 0 : index
    %4 = vector.load %arg3[%c0_4, %c0_5] : memref<1x32xf32, #tpu.memory_space<vmem>>, vector<1x32xf32>
    %5 = vector.broadcast %4 : vector<1x32xf32> to vector<64x32xf32>
    %6 = arith.addf %3, %5 : vector<64x32xf32>
    %cst_6 = arith.constant 0.000000e+00 : f32
    %7 = vector.broadcast %cst_6 : f32 to vector<64x32xf32>
    %8 = arith.cmpf oge, %6, %7 : vector<64x32xf32>
    %cst_7 = arith.constant 0.00999999977 : f32
    %9 = vector.broadcast %cst_7 : f32 to vector<64x32xf32>
    %10 = arith.mulf %9, %6 : vector<64x32xf32>
    %11 = arith.select %8, %6, %10 : vector<64x32xi1>, vector<64x32xf32>
    %12 = vector.shape_cast %11 : vector<64x32xf32> to vector<8x8x32xf32>
    %cst_8 = arith.constant dense<0.000000e+00> : vector<8x32xf32>
    %13 = vector.multi_reduction <add>, %12, %cst_8 [1] : vector<8x8x32xf32> to vector<8x32xf32>
    %cst_9 = arith.constant 1.250000e-01 : f32
    %14 = vector.broadcast %cst_9 : f32 to vector<8x32xf32>
    %15 = arith.mulf %13, %14 : vector<8x32xf32>
    %c0_10 = arith.constant 0 : index
    %c0_11 = arith.constant 0 : index
    %16 = vector.load %arg4[%c0_10, %c0_11] : memref<8x32xf32, #tpu.memory_space<vmem>>, vector<8x32xf32>
    tpu.vector_store %arg4[%c0_10, %c0_11], %15 {strides = array<i32>} : memref<8x32xf32, #tpu.memory_space<vmem>>, vector<8x32xf32>,
    return
  }
  func.func @transform_0(%arg0: i32) -> (i32, i32, i32) {
    %c0_i32 = arith.constant 0 : i32
    %c0_i32_0 = arith.constant 0 : i32
    %c0_i32_1 = arith.constant 0 : i32
    return %arg0, %c0_i32, %c0_i32_0 : i32, i32, i32
  }
  func.func @transform_1(%arg0: i32) -> (i32, i32) {
    %c0_i32 = arith.constant 0 : i32
    %c0_i32_0 = arith.constant 0 : i32
    %c0_i32_1 = arith.constant 0 : i32
    return %c0_i32, %c0_i32_0 : i32, i32
  }
  func.func @transform_2(%arg0: i32) -> (i32, i32) {
    %c0_i32 = arith.constant 0 : i32
    %c0_i32_0 = arith.constant 0 : i32
    %c0_i32_1 = arith.constant 0 : i32
    return %c0_i32, %c0_i32_0 : i32, i32
  }
  func.func @transform_3(%arg0: i32) -> (i32, i32) {
    %c0_i32 = arith.constant 0 : i32
    %c0_i32_0 = arith.constant 0 : i32
    return %arg0, %c0_i32 : i32, i32
  }
}

</mosaic_0001>

<bundles_post_ra>
// kernel: tpu_custom_call.1
= control target key start
LH: loop header
LB: loop body
LE: loop exit
PB: predicated region body
PF: predicated region fallthrough
CT: control target
= control target key end

     0   :  { %8 = vsyncpa [#allocation3], 0  ;;  %s537_s0 = inlined_call_operand.hbm [shape: f32[2,8,32], index: 0, kind: input, shape index: {}]   ;;  %s538_s1 = inlined_call_operand.hbm [shape: f32[32,32], index: 1, kind: input, shape index: {}]   ;;  %s539_s2 = inlined_call_operand.vmem [shape: f32[1,32], index: 2, kind: input, shape index: {}]   ;;  %s540_s3 = inlined_call_operand.hbm [shape: f32[2,32], index: 3, kind: output, shape index: {}]  }
   0x1   :  { %9 = vsyncpa [#allocation6], 0 }
   0x2   :  { %10 = vsyncpa [#allocation4], 0 }
   0x3   :  { %15 = vsyncadd [#allocation3], 768  ;;  %s454_s12 = smov [#allocation2]   ;;  %s382_s16 = scalar_lea.hbm %s537_s0, 256 }
   0x4   :  { %s16_s13 = sshll.u32 %s454_s12, 4  ;;  %p383_p0 = scmp.ne.s32.totalorder %s537_s0, %s382_s16  ;;  %s17_s13 = int_to_ptr.vmem [resolvable:$true] %s16_s13 }
   0x5   :  { %p386_p1 = scmp.lt.u32.totalorder %s382_s16, %s537_s0 }
   0x7   :  { %p388_p2 = pnand %p386_p1, %p383_p0 }
   0x9   :  { %391 = shalt.err (!%p388_p2)
}
   0xa   :  { %s392_s21 = scalar_lea.vmem %s17_s13, 256  ;;  %s396_s22 = scalar_lea.vmem %s17_s13, 1024 }
   0xb   :  { %p393_p3 = scmp.ne.s32.totalorder %s17_s13, %s392_s21  ;;  %p397_p4 = scmp.lt.s32.totalorder %s17_s13, %s17_s13 }
   0xc   :  { %p398_p5 = scmp.lt.s32.totalorder %s396_s22, %s392_s21 }
   0xe   :  { %p399_p6 = por %p398_p5, %p397_p4 }
  0x10   :  { %p400_p7 = pnand %p399_p6, %p393_p3 }
  0x12   :  { %403 = shalt.err (!%p400_p7)
}
  0x13   :  { %s455_s23 = smov 128   ;;  %s456_s24 = smov 8  }
  0x14   :  { %22 = dma.hbm_to_vmem [thread:$0]  %s537_s0, 256, %s17_s13, [#allocation3], %s455_s23, %s455_s23, %s456_s24  }
  0x15   :  { %s457_s27 = smov [#allocation5]   ;;  %s404_s4 = scalar_lea.hbm %s538_s1, 512 }
  0x16   :  { %s28_s28 = sshll.u32 %s457_s27, 4  ;;  %p405_p8 = scmp.ne.s32.totalorder %s538_s1, %s404_s4  ;;  %s29_s28 = int_to_ptr.vmem [resolvable:$true] %s28_s28 }
  0x17   :  { %p408_p9 = scmp.lt.u32.totalorder %s404_s4, %s538_s1 }
  0x19   :  { %p410_p10 = pnand %p408_p9, %p405_p8 }
  0x1b   :  { %413 = shalt.err (!%p410_p10)
}
  0x1c   :  { %s414_s9 = scalar_lea.vmem %s29_s28, 512  ;;  %p419_p12 = scmp.lt.s32.totalorder %s29_s28, %s29_s28 }
  0x1d   :  { %p415_p11 = scmp.ne.s32.totalorder %s29_s28, %s414_s9  ;;  %p420_p13 = scmp.lt.s32.totalorder %s414_s9, %s414_s9 }
  0x1f   :  { %p421_p0 = por %p420_p13, %p419_p12 }
  0x21   :  { %p422_p1 = pnand %p421_p0, %p415_p11 }
  0x23   :  { %425 = shalt.err (!%p422_p1)
}
  0x24   :  { %34 = dma.hbm_to_vmem [thread:$0]  %s538_s1, 512, %s29_s28, [#allocation6], %s455_s23, %s455_s23, %s456_s24  }
  0x25   :  { %448 = dma.done.wait [#allocation3], 1024  }
  0x26   :  { %449 = vsyncadd [#allocation3], 4294966272 }
  0x27   :  { %450 = dma.done.wait [#allocation6], 512  }
  0x28   :  { %451 = vsyncadd [#allocation6], 4294966784  ;;  %vm62_vm0 = vcmask 261120   ;;  %v51_v0 = vld [vmem:[#allocation5] sm:$0xff]  ;;  %v52_v1 = vld [vmem:[#allocation5 + $0x8] sm:$0xff]  ;;  %vm288_vm8 = vcmask 1041409  }
  0x29   :  { %v53_v2 = vld [vmem:[#allocation5 + $0x10] sm:$0xff]  ;;  %v363_v3 = vpack.c.bf16 %v52_v1, %v51_v0  ;;  %v54_v4 = vld [vmem:[#allocation5 + $0x18] sm:$0xff]  ;;  %v43_v5 = vld [vmem:[#allocation2] sm:$0xff]  ;;  %vm290_vm10 = vcmask 1042434   ;;  %vm292_vm11 = vcmask 1043459   ;;  %vm294_vm12 = vcmask 1044484  }
  0x2a   :  { %v47_v6 = vld [vmem:[#allocation2 + $0x20] sm:$0xff]  ;;  %v367_v7 = vpack.c.bf16 %v54_v4, %v53_v2  ;;  %351 = vmatprep.mubr.msk.f32.mxu0 %vm62_vm0, %v43_v5  ;;  %v44_v8 = vld [vmem:[#allocation2 + $0x8] sm:$0xff]  ;;  %v45_v10 = vld [vmem:[#allocation2 + $0x10] sm:$0xff]  ;;  %vm296_vm13 = vcmask 1045509   ;;  %vm298_vm14 = vcmask 1046534   ;;  %vm300_vm15 = vcmask 1047559  }
  0x2b   :  { %357 = vmatprep.mubr.msk.f32.mxu1 %vm62_vm0, %v47_v6  ;;  %364 = vmatprep.subr.bf16.mxu0 %v363_v3  ;;  %v48_v9 = vld [vmem:[#allocation2 + $0x28] sm:$0xff]  ;;  %v49_v11 = vld [vmem:[#allocation2 + $0x30] sm:$0xff]  ;;  %v46_v12 = vld [vmem:[#allocation2 + $0x18] sm:$0xff] }
  0x2c   :  { %371 = vmatprep.subr.bf16.mxu1 %v363_v3  ;;  %366 = vmatpush3.bf16.msra.mxu0 %v363_v3  ;;  %v50_v13 = vld [vmem:[#allocation2 + $0x38] sm:$0xff]  ;;  %v322_v14 = vld [vmem:[%s539_s2] ss:$0 sm:$0xff] }
  0x2d   :  { %373 = vmatpush3.bf16.msra.mxu1 %v363_v3  ;;  %368 = vmatprep.subr.bf16.mxu0 %v367_v7 }
  0x2e   :  { %372 = vmatprep.subr.bf16.mxu1 %v367_v7 }
  0x30   :  { %370 = vmatpush3.bf16.msra.mxu0 %v367_v7 }
  0x31   :  { %374 = vmatpush3.bf16.msra.mxu1 %v367_v7 }
  0x33   :  { %352 = vmatmul.mubr.msk.f32.vlgmr.msra.gmra.mrb[0].mxu0 %vm62_vm0, %v44_v8 }
  0x34   :  { %358 = vmatmul.mubr.msk.f32.vlgmr.msra.gmra.mrb[0].mxu1 %vm62_vm0, %v48_v9  ;;  %354 = vmatprep.mubr.msk.f32.mxu0 %vm62_vm0, %v45_v10 }
  0x35   :  { %360 = vmatprep.mubr.msk.f32.mxu1 %vm62_vm0, %v49_v11 }
  0x37   :  { %355 = vmatmul.mubr.msk.f32.gmra.mrb[2].mxu0 %vm62_vm0, %v46_v12 }
  0x38   :  { %361 = vmatmul.mubr.msk.f32.gmra.mrb[2].mxu1 %vm62_vm0, %v50_v13 }
 0x106   :  { %v353_v15 = vpop.f32.mrb[0].mxu0 }
 0x107   :  { %v359_v16 = vpop.f32.mrb[0].mxu1  ;;  %v159_v17 = vadd.f32 %v353_v15, %v322_v14  ;;  %v153_v19 = vpop.f32.mrb[1].mxu0 }
 0x108   :  { %v179_v18 = vadd.f32 %v359_v16, %v322_v14  ;;  %v173_v20 = vpop.f32.mrb[1].mxu1  ;;  %v154_v21 = vadd.f32 %v322_v14, %v153_v19 }
 0x109   :  { %v174_v22 = vadd.f32 %v322_v14, %v173_v20  ;;  %vm193_vm1 = vcmp.ge.f32.partialorder %v159_v17, 0.0  ;;  %v201_v23 = vmul.f32 0.01, %v159_v17 }
 0x10a   :  { %vm197_vm2 = vcmp.ge.f32.partialorder %v179_v18, 0.0  ;;  %v205_v24 = vmul.f32 0.01, %v179_v18  ;;  %vm192_vm3 = vcmp.ge.f32.partialorder %v154_v21, 0.0  ;;  %v200_v25 = vmul.f32 0.01, %v154_v21 }
 0x10b   :  { %vm196_vm4 = vcmp.ge.f32.partialorder %v174_v22, 0.0  ;;  %v204_v26 = vmul.f32 0.01, %v174_v22  ;;  %v209_v27 = vsel %vm193_vm1, %v159_v17, %v201_v23  ;;  %v356_v29 = vpop.f32.mrb[2].mxu0  ;;  %v362_v30 = vpop.f32.mrb[2].mxu1 }
 0x10c   :  { %v213_v28 = vsel %vm197_vm2, %v179_v18, %v205_v24  ;;  %v223_v31 = vsel %vm62_vm0, %v209_v27, 0.0  ;;  %v208_v33 = vsel %vm192_vm3, %v154_v21, %v200_v25  ;;  %v163_v35 = vpop.f32.mrb[3].mxu0  ;;  %v183_v36 = vpop.f32.mrb[3].mxu1  ;;  %v169_v42 = vadd.f32 %v356_v29, %v322_v14 }
 0x10d   :  { %v251_v32 = vsel %vm62_vm0, %v213_v28, 0.0  ;;  %v212_v34 = vsel %vm196_vm4, %v174_v22, %v204_v26  ;;  %v224_v37 = vrot.slane %v223_v31, 4  ;;  %v216_v38 = vsel %vm62_vm0, %v208_v33, 0.0 }
 0x10e   :  { %v244_v39 = vsel %vm62_vm0, %v212_v34, 0.0  ;;  %v252_v40 = vrot.slane %v251_v32, 4  ;;  %v217_v41 = vrot.slane %v216_v38, 4  ;;  %v189_v43 = vadd.f32 %v362_v30, %v322_v14 }
 0x10f   :  { %v225_v44 = vadd.f32 %v224_v37, %v223_v31  ;;  %v245_v45 = vrot.slane %v244_v39, 4  ;;  %vm195_vm5 = vcmp.ge.f32.partialorder %v169_v42, 0.0  ;;  %v203_v47 = vmul.f32 0.01, %v169_v42 }
 0x110   :  { %v218_v46 = vadd.f32 %v217_v41, %v216_v38  ;;  %v164_v48 = vadd.f32 %v322_v14, %v163_v35  ;;  %vm199_vm6 = vcmp.ge.f32.partialorder %v189_v43, 0.0  ;;  %v207_v50 = vmul.f32 0.01, %v189_v43 }
 0x111   :  { %v226_v49 = vrot.slane %v225_v44, 2  ;;  %v253_v51 = vadd.f32 %v252_v40, %v251_v32  ;;  %v211_v53 = vsel %vm195_vm5, %v169_v42, %v203_v47  ;;  %v246_v55 = vadd.f32 %v245_v45, %v244_v39 }
 0x112   :  { %v219_v52 = vrot.slane %v218_v46, 2  ;;  %v237_v56 = vsel %vm62_vm0, %v211_v53, 0.0  ;;  %v215_v57 = vsel %vm199_vm6, %v189_v43, %v207_v50  ;;  %vm194_vm7 = vcmp.ge.f32.partialorder %v164_v48, 0.0 }
 0x113   :  { %v227_v54 = vadd.f32 %v226_v49, %v225_v44  ;;  %v238_v59 = vrot.slane %v237_v56, 4  ;;  %v265_v60 = vsel %vm62_vm0, %v215_v57, 0.0  ;;  %v202_v63 = vmul.f32 0.01, %v164_v48 }
 0x114   :  { %v220_v58 = vadd.f32 %v219_v52, %v218_v46  ;;  %v266_v62 = vrot.slane %v265_v60, 4  ;;  %v184_v0 = vadd.f32 %v322_v14, %v183_v36  ;;  %v247_v4 = vrot.slane %v246_v55, 2 }
 0x115   :  { %v228_v61 = vrot.slane %v227_v54, 1  ;;  %v239_v2 = vadd.f32 %v238_v59, %v237_v56  ;;  %v210_v6 = vsel %vm194_vm7, %v164_v48, %v202_v63  ;;  %v254_v7 = vrot.slane %v253_v51, 2 }
 0x116   :  { %v221_v1 = vrot.slane %v220_v58, 1  ;;  %v267_v5 = vadd.f32 %v266_v62, %v265_v60  ;;  %v230_v10 = vsel %vm62_vm0, %v210_v6, 0.0  ;;  %vm198_vm9 = vcmp.ge.f32.partialorder %v184_v0, 0.0 }
 0x117   :  { %v229_v3 = vadd.f32 %v228_v61, %v227_v54  ;;  %v240_v9 = vrot.slane %v239_v2, 2  ;;  %v231_v12 = vrot.slane %v230_v10, 4  ;;  %v206_v16 = vmul.f32 0.01, %v184_v0 }
 0x118   :  { %v222_v8 = vadd.f32 %v221_v1, %v220_v58  ;;  %v248_v17 = vadd.f32 %v247_v4, %v246_v55  ;;  %v268_v14 = vrot.slane %v267_v5, 2  ;;  %v255_v19 = vadd.f32 %v254_v7, %v253_v51 }
 0x119   :  { %v273_v11 = vmul.f32 0.125, %v229_v3  ;;  %v241_v15 = vadd.f32 %v240_v9, %v239_v2  ;;  %v232_v18 = vadd.f32 %v231_v12, %v230_v10  ;;  %v214_v21 = vsel %vm198_vm9, %v184_v0, %v206_v16 }
 0x11a   :  { %v272_v13 = vmul.f32 0.125, %v222_v8  ;;  %v258_v23 = vsel %vm62_vm0, %v214_v21, 0.0  ;;  %v249_v26 = vrot.slane %v248_v17, 1  ;;  %v269_v27 = vadd.f32 %v268_v14, %v267_v5 }
 0x11b   :  { %v233_v22 = vrot.slane %v232_v18, 2  ;;  %v242_v24 = vrot.slane %v241_v15, 1  ;;  %v259_v25 = vrot.slane %v258_v23, 4  ;;  %v256_v29 = vrot.slane %v255_v19, 1 }
 0x11c   :  { %v289_v20 = vsel %vm288_vm8, %v273_v11, %v272_v13  ;;  %v250_v34 = vadd.f32 %v249_v26, %v248_v17  ;;  %v270_v35 = vrot.slane %v269_v27, 1 }
 0x11d   :  { %v234_v28 = vadd.f32 %v233_v22, %v232_v18  ;;  %v260_v30 = vadd.f32 %v259_v25, %v258_v23  ;;  %v243_v32 = vadd.f32 %v242_v24, %v241_v15  ;;  %v257_v37 = vadd.f32 %v256_v29, %v255_v19 }
 0x11e   :  { %v276_v42 = vmul.f32 0.125, %v250_v34  ;;  %v271_v43 = vadd.f32 %v270_v35, %v269_v27 }
 0x11f   :  { %v235_v31 = vrot.slane %v234_v28, 1  ;;  %v261_v33 = vrot.slane %v260_v30, 2  ;;  %v275_v40 = vmul.f32 0.125, %v243_v32  ;;  %v277_v45 = vmul.f32 0.125, %v257_v37 }
 0x120   :  { %v279_v51 = vmul.f32 0.125, %v271_v43 }
 0x121   :  { %v236_v36 = vadd.f32 %v235_v31, %v234_v28  ;;  %v262_v38 = vadd.f32 %v261_v33, %v260_v30 }
 0x123   :  { %v274_v39 = vmul.f32 0.125, %v236_v36  ;;  %v263_v41 = vrot.slane %v262_v38, 1 }
 0x125   :  { %v291_v44 = vsel %vm290_vm10, %v274_v39, %v289_v20  ;;  %v264_v47 = vadd.f32 %v263_v41, %v262_v38 }
 0x126   :  { %v293_v46 = vsel %vm292_vm11, %v275_v40, %v291_v44 }
 0x127   :  { %v295_v48 = vsel %vm294_vm12, %v276_v42, %v293_v46  ;;  %v278_v49 = vmul.f32 0.125, %v264_v47 }
 0x128   :  { %v297_v50 = vsel %vm296_vm13, %v277_v45, %v295_v48 }
 0x129   :  { %v299_v52 = vsel %vm298_vm14, %v278_v49, %v297_v50 }
 0x12a   :  { %v301_v53 = vsel %vm300_vm15, %v279_v51, %v299_v52 }
 0x12b   :  { %303 = vst.msk [vmem:[#allocation7] sm:$0xff] %vm62_vm0, %v301_v53 }
 0x12c   :  { %308 = vsyncadd [#allocation4], 96  ;;  %s458_s2 = smov [#allocation7]  }
 0x12d   :  { %s309_s12 = sshll.u32 %s458_s2, 4  ;;  %s310_s12 = int_to_ptr.vmem [resolvable:$true] %s309_s12 }
 0x12e   :  { %s426_s13 = scalar_lea.vmem %s310_s12, 32  ;;  %s430_s14 = scalar_lea.vmem %s310_s12, 128 }
 0x12f   :  { %p427_p2 = scmp.ne.s32.totalorder %s310_s12, %s426_s13  ;;  %p431_p3 = scmp.lt.s32.totalorder %s310_s12, %s310_s12 }
 0x130   :  { %p432_p4 = scmp.lt.s32.totalorder %s430_s14, %s426_s13 }
 0x132   :  { %p433_p5 = por %p432_p4, %p431_p3 }
 0x134   :  { %p434_p6 = pnand %p433_p5, %p427_p2 }
 0x136   :  { %437 = shalt.err (!%p434_p6)
}
 0x137   :  { %s438_s17 = scalar_lea.hbm %s540_s3, 32 }
 0x138   :  { %p439_p7 = scmp.ne.s32.totalorder %s540_s3, %s438_s17  ;;  %p442_p8 = scmp.lt.u32.totalorder %s438_s17, %s540_s3 }
 0x13a   :  { %p444_p9 = pnand %p442_p8, %p439_p7 }
 0x13c   :  { %447 = shalt.err (!%p444_p9)
}
 0x13d   :  { %s459_s22 = smov 32   ;;  %s460_s23 = smov 2  }
 0x13e   :  { %315 = dma.vmem_to_hbm [thread:$0]  %s310_s12, 32, %s540_s3, [#allocation4], %s459_s22, %s459_s22, %s460_s23  }
 0x13f   :  { %452 = dma.done.wait [#allocation4], 128  }
 0x140   :  { %453 = vsyncadd [#allocation4], 4294967168 }
 0x141   :  { %319 = vsyncpa [#allocation3], 1 }
 0x142   :  { %320 = vsyncpa [#allocation6], 1 }
 0x143   :  { %321 = vsyncpa [#allocation4], 1 }

// kernel: tpu_custom_call.1
= control target key start
LH: loop header
LB: loop body
LE: loop exit
PB: predicated region body
PF: predicated region fallthrough
CT: control target
= control target key end

     0   :  { %8 = vsyncpa [#allocation3], 0  ;;  %s537_s0 = inlined_call_operand.hbm [shape: f32[2,8,32], index: 0, kind: input, shape index: {}]   ;;  %s538_s1 = inlined_call_operand.hbm [shape: f32[32,32], index: 1, kind: input, shape index: {}]   ;;  %s539_s2 = inlined_call_operand.vmem [shape: f32[1,32], index: 2, kind: input, shape index: {}]   ;;  %s540_s3 = inlined_call_operand.hbm [shape: f32[2,32], index: 3, kind: output, shape index: {}]  }
   0x1   :  { %9 = vsyncpa [#allocation6], 0 }
   0x2   :  { %10 = vsyncpa [#allocation4], 0 }
   0x3   :  { %15 = vsyncadd [#allocation3], 768  ;;  %s454_s12 = smov [#allocation2]   ;;  %s382_s16 = scalar_lea.hbm %s537_s0, 256 }
   0x4   :  { %s16_s13 = sshll.u32 %s454_s12, 4  ;;  %p383_p0 = scmp.ne.s32.totalorder %s537_s0, %s382_s16  ;;  %s17_s13 = int_to_ptr.vmem [resolvable:$true] %s16_s13 }
   0x5   :  { %p386_p1 = scmp.lt.u32.totalorder %s382_s16, %s537_s0 }
   0x7   :  { %p388_p2 = pnand %p386_p1, %p383_p0 }
   0x9   :  { %391 = shalt.err (!%p388_p2)
}
   0xa   :  { %s392_s21 = scalar_lea.vmem %s17_s13, 256  ;;  %s396_s22 = scalar_lea.vmem %s17_s13, 1024 }
   0xb   :  { %p393_p3 = scmp.ne.s32.totalorder %s17_s13, %s392_s21  ;;  %p397_p4 = scmp.lt.s32.totalorder %s17_s13, %s17_s13 }
   0xc   :  { %p398_p5 = scmp.lt.s32.totalorder %s396_s22, %s392_s21 }
   0xe   :  { %p399_p6 = por %p398_p5, %p397_p4 }
  0x10   :  { %p400_p7 = pnand %p399_p6, %p393_p3 }
  0x12   :  { %403 = shalt.err (!%p400_p7)
}
  0x13   :  { %s455_s23 = smov 128   ;;  %s456_s24 = smov 8  }
  0x14   :  { %22 = dma.hbm_to_vmem [thread:$0]  %s537_s0, 256, %s17_s13, [#allocation3], %s455_s23, %s455_s23, %s456_s24  }
  0x15   :  { %s457_s27 = smov [#allocation5]   ;;  %s404_s4 = scalar_lea.hbm %s538_s1, 512 }
  0x16   :  { %s28_s28 = sshll.u32 %s457_s27, 4  ;;  %p405_p8 = scmp.ne.s32.totalorder %s538_s1, %s404_s4  ;;  %s29_s28 = int_to_ptr.vmem [resolvable:$true] %s28_s28 }
  0x17   :  { %p408_p9 = scmp.lt.u32.totalorder %s404_s4, %s538_s1 }
  0x19   :  { %p410_p10 = pnand %p408_p9, %p405_p8 }
  0x1b   :  { %413 = shalt.err (!%p410_p10)
}
  0x1c   :  { %s414_s9 = scalar_lea.vmem %s29_s28, 512  ;;  %p419_p12 = scmp.lt.s32.totalorder %s29_s28, %s29_s28 }
  0x1d   :  { %p415_p11 = scmp.ne.s32.totalorder %s29_s28, %s414_s9  ;;  %p420_p13 = scmp.lt.s32.totalorder %s414_s9, %s414_s9 }
  0x1f   :  { %p421_p0 = por %p420_p13, %p419_p12 }
  0x21   :  { %p422_p1 = pnand %p421_p0, %p415_p11 }
  0x23   :  { %425 = shalt.err (!%p422_p1)
}
  0x24   :  { %34 = dma.hbm_to_vmem [thread:$0]  %s538_s1, 512, %s29_s28, [#allocation6], %s455_s23, %s455_s23, %s456_s24  }
  0x25   :  { %448 = dma.done.wait [#allocation3], 1024  }
  0x26   :  { %449 = vsyncadd [#allocation3], 4294966272 }
  0x27   :  { %450 = dma.done.wait [#allocation6], 512  }
  0x28   :  { %451 = vsyncadd [#allocation6], 4294966784  ;;  %vm62_vm0 = vcmask 261120   ;;  %v51_v0 = vld [vmem:[#allocation5] sm:$0xff]  ;;  %v52_v1 = vld [vmem:[#allocation5 + $0x8] sm:$0xff]  ;;  %vm288_vm8 = vcmask 1041409  }
  0x29   :  { %v53_v2 = vld [vmem:[#allocation5 + $0x10] sm:$0xff]  ;;  %v363_v3 = vpack.c.bf16 %v52_v1, %v51_v0  ;;  %v54_v4 = vld [vmem:[#allocation5 + $0x18] sm:$0xff]  ;;  %v43_v5 = vld [vmem:[#allocation2] sm:$0xff]  ;;  %vm290_vm10 = vcmask 1042434   ;;  %vm292_vm11 = vcmask 1043459   ;;  %vm294_vm12 = vcmask 1044484  }
  0x2a   :  { %v47_v6 = vld [vmem:[#allocation2 + $0x20] sm:$0xff]  ;;  %v367_v7 = vpack.c.bf16 %v54_v4, %v53_v2  ;;  %351 = vmatprep.mubr.msk.f32.mxu0 %vm62_vm0, %v43_v5  ;;  %v44_v8 = vld [vmem:[#allocation2 + $0x8] sm:$0xff]  ;;  %v45_v10 = vld [vmem:[#allocation2 + $0x10] sm:$0xff]  ;;  %vm296_vm13 = vcmask 1045509   ;;  %vm298_vm14 = vcmask 1046534   ;;  %vm300_vm15 = vcmask 1047559  }
  0x2b   :  { %357 = vmatprep.mubr.msk.f32.mxu1 %vm62_vm0, %v47_v6  ;;  %364 = vmatprep.subr.bf16.mxu0 %v363_v3  ;;  %v48_v9 = vld [vmem:[#allocation2 + $0x28] sm:$0xff]  ;;  %v49_v11 = vld [vmem:[#allocation2 + $0x30] sm:$0xff]  ;;  %v46_v12 = vld [vmem:[#allocation2 + $0x18] sm:$0xff] }
  0x2c   :  { %371 = vmatprep.subr.bf16.mxu1 %v363_v3  ;;  %366 = vmatpush3.bf16.msra.mxu0 %v363_v3  ;;  %v50_v13 = vld [vmem:[#allocation2 + $0x38] sm:$0xff]  ;;  %v322_v14 = vld [vmem:[%s539_s2] ss:$0 sm:$0xff] }
  0x2d   :  { %373 = vmatpush3.bf16.msra.mxu1 %v363_v3  ;;  %368 = vmatprep.subr.bf16.mxu0 %v367_v7 }
  0x2e   :  { %372 = vmatprep.subr.bf16.mxu1 %v367_v7 }
  0x30   :  { %370 = vmatpush3.bf16.msra.mxu0 %v367_v7 }
  0x31   :  { %374 = vmatpush3.bf16.msra.mxu1 %v367_v7 }
  0x33   :  { %352 = vmatmul.mubr.msk.f32.vlgmr.msra.gmra.mrb[0].mxu0 %vm62_vm0, %v44_v8 }
  0x34   :  { %358 = vmatmul.mubr.msk.f32.vlgmr.msra.gmra.mrb[0].mxu1 %vm62_vm0, %v48_v9  ;;  %354 = vmatprep.mubr.msk.f32.mxu0 %vm62_vm0, %v45_v10 }
  0x35   :  { %360 = vmatprep.mubr.msk.f32.mxu1 %vm62_vm0, %v49_v11 }
  0x37   :  { %355 = vmatmul.mubr.msk.f32.gmra.mrb[2].mxu0 %vm62_vm0, %v46_v12 }
  0x38   :  { %361 = vmatmul.mubr.msk.f32.gmra.mrb[2].mxu1 %vm62_vm0, %v50_v13 }
 0x106   :  { %v353_v15 = vpop.f32.mrb[0].mxu0 }
 0x107   :  { %v359_v16 = vpop.f32.mrb[0].mxu1  ;;  %v159_v17 = vadd.f32 %v353_v15, %v322_v14  ;;  %v153_v19 = vpop.f32.mrb[1].mxu0 }
 0x108   :  { %v179_v18 = vadd.f32 %v359_v16, %v322_v14  ;;  %v173_v20 = vpop.f32.mrb[1].mxu1  ;;  %v154_v21 = vadd.f32 %v322_v14, %v153_v19 }
 0x109   :  { %v174_v22 = vadd.f32 %v322_v14, %v173_v20  ;;  %vm193_vm1 = vcmp.ge.f32.partialorder %v159_v17, 0.0  ;;  %v201_v23 = vmul.f32 0.01, %v159_v17 }
 0x10a   :  { %vm197_vm2 = vcmp.ge.f32.partialorder %v179_v18, 0.0  ;;  %v205_v24 = vmul.f32 0.01, %v179_v18  ;;  %vm192_vm3 = vcmp.ge.f32.partialorder %v154_v21, 0.0  ;;  %v200_v25 = vmul.f32 0.01, %v154_v21 }
 0x10b   :  { %vm196_vm4 = vcmp.ge.f32.partialorder %v174_v22, 0.0  ;;  %v204_v26 = vmul.f32 0.01, %v174_v22  ;;  %v209_v27 = vsel %vm193_vm1, %v159_v17, %v201_v23  ;;  %v356_v29 = vpop.f32.mrb[2].mxu0  ;;  %v362_v30 = vpop.f32.mrb[2].mxu1 }
 0x10c   :  { %v213_v28 = vsel %vm197_vm2, %v179_v18, %v205_v24  ;;  %v223_v31 = vsel %vm62_vm0, %v209_v27, 0.0  ;;  %v208_v33 = vsel %vm192_vm3, %v154_v21, %v200_v25  ;;  %v163_v35 = vpop.f32.mrb[3].mxu0  ;;  %v183_v36 = vpop.f32.mrb[3].mxu1  ;;  %v169_v42 = vadd.f32 %v356_v29, %v322_v14 }
 0x10d   :  { %v251_v32 = vsel %vm62_vm0, %v213_v28, 0.0  ;;  %v212_v34 = vsel %vm196_vm4, %v174_v22, %v204_v26  ;;  %v224_v37 = vrot.slane %v223_v31, 4  ;;  %v216_v38 = vsel %vm62_vm0, %v208_v33, 0.0 }
 0x10e   :  { %v244_v39 = vsel %vm62_vm0, %v212_v34, 0.0  ;;  %v252_v40 = vrot.slane %v251_v32, 4  ;;  %v217_v41 = vrot.slane %v216_v38, 4  ;;  %v189_v43 = vadd.f32 %v362_v30, %v322_v14 }
 0x10f   :  { %v225_v44 = vadd.f32 %v224_v37, %v223_v31  ;;  %v245_v45 = vrot.slane %v244_v39, 4  ;;  %vm195_vm5 = vcmp.ge.f32.partialorder %v169_v42, 0.0  ;;  %v203_v47 = vmul.f32 0.01, %v169_v42 }
 0x110   :  { %v218_v46 = vadd.f32 %v217_v41, %v216_v38  ;;  %v164_v48 = vadd.f32 %v322_v14, %v163_v35  ;;  %vm199_vm6 = vcmp.ge.f32.partialorder %v189_v43, 0.0  ;;  %v207_v50 = vmul.f32 0.01, %v189_v43 }
 0x111   :  { %v226_v49 = vrot.slane %v225_v44, 2  ;;  %v253_v51 = vadd.f32 %v252_v40, %v251_v32  ;;  %v211_v53 = vsel %vm195_vm5, %v169_v42, %v203_v47  ;;  %v246_v55 = vadd.f32 %v245_v45, %v244_v39 }
 0x112   :  { %v219_v52 = vrot.slane %v218_v46, 2  ;;  %v237_v56 = vsel %vm62_vm0, %v211_v53, 0.0  ;;  %v215_v57 = vsel %vm199_vm6, %v189_v43, %v207_v50  ;;  %vm194_vm7 = vcmp.ge.f32.partialorder %v164_v48, 0.0 }
 0x113   :  { %v227_v54 = vadd.f32 %v226_v49, %v225_v44  ;;  %v238_v59 = vrot.slane %v237_v56, 4  ;;  %v265_v60 = vsel %vm62_vm0, %v215_v57, 0.0  ;;  %v202_v63 = vmul.f32 0.01, %v164_v48 }
 0x114   :  { %v220_v58 = vadd.f32 %v219_v52, %v218_v46  ;;  %v266_v62 = vrot.slane %v265_v60, 4  ;;  %v184_v0 = vadd.f32 %v322_v14, %v183_v36  ;;  %v247_v4 = vrot.slane %v246_v55, 2 }
 0x115   :  { %v228_v61 = vrot.slane %v227_v54, 1  ;;  %v239_v2 = vadd.f32 %v238_v59, %v237_v56  ;;  %v210_v6 = vsel %vm194_vm7, %v164_v48, %v202_v63  ;;  %v254_v7 = vrot.slane %v253_v51, 2 }
 0x116   :  { %v221_v1 = vrot.slane %v220_v58, 1  ;;  %v267_v5 = vadd.f32 %v266_v62, %v265_v60  ;;  %v230_v10 = vsel %vm62_vm0, %v210_v6, 0.0  ;;  %vm198_vm9 = vcmp.ge.f32.partialorder %v184_v0, 0.0 }
 0x117   :  { %v229_v3 = vadd.f32 %v228_v61, %v227_v54  ;;  %v240_v9 = vrot.slane %v239_v2, 2  ;;  %v231_v12 = vrot.slane %v230_v10, 4  ;;  %v206_v16 = vmul.f32 0.01, %v184_v0 }
 0x118   :  { %v222_v8 = vadd.f32 %v221_v1, %v220_v58  ;;  %v248_v17 = vadd.f32 %v247_v4, %v246_v55  ;;  %v268_v14 = vrot.slane %v267_v5, 2  ;;  %v255_v19 = vadd.f32 %v254_v7, %v253_v51 }
 0x119   :  { %v273_v11 = vmul.f32 0.125, %v229_v3  ;;  %v241_v15 = vadd.f32 %v240_v9, %v239_v2  ;;  %v232_v18 = vadd.f32 %v231_v12, %v230_v10  ;;  %v214_v21 = vsel %vm198_vm9, %v184_v0, %v206_v16 }
 0x11a   :  { %v272_v13 = vmul.f32 0.125, %v222_v8  ;;  %v258_v23 = vsel %vm62_vm0, %v214_v21, 0.0  ;;  %v249_v26 = vrot.slane %v248_v17, 1  ;;  %v269_v27 = vadd.f32 %v268_v14, %v267_v5 }
 0x11b   :  { %v233_v22 = vrot.slane %v232_v18, 2  ;;  %v242_v24 = vrot.slane %v241_v15, 1  ;;  %v259_v25 = vrot.slane %v258_v23, 4  ;;  %v256_v29 = vrot.slane %v255_v19, 1 }
 0x11c   :  { %v289_v20 = vsel %vm288_vm8, %v273_v11, %v272_v13  ;;  %v250_v34 = vadd.f32 %v249_v26, %v248_v17  ;;  %v270_v35 = vrot.slane %v269_v27, 1 }
 0x11d   :  { %v234_v28 = vadd.f32 %v233_v22, %v232_v18  ;;  %v260_v30 = vadd.f32 %v259_v25, %v258_v23  ;;  %v243_v32 = vadd.f32 %v242_v24, %v241_v15  ;;  %v257_v37 = vadd.f32 %v256_v29, %v255_v19 }
 0x11e   :  { %v276_v42 = vmul.f32 0.125, %v250_v34  ;;  %v271_v43 = vadd.f32 %v270_v35, %v269_v27 }
 0x11f   :  { %v235_v31 = vrot.slane %v234_v28, 1  ;;  %v261_v33 = vrot.slane %v260_v30, 2  ;;  %v275_v40 = vmul.f32 0.125, %v243_v32  ;;  %v277_v45 = vmul.f32 0.125, %v257_v37 }
 0x120   :  { %v279_v51 = vmul.f32 0.125, %v271_v43 }
 0x121   :  { %v236_v36 = vadd.f32 %v235_v31, %v234_v28  ;;  %v262_v38 = vadd.f32 %v261_v33, %v260_v30 }
 0x123   :  { %v274_v39 = vmul.f32 0.125, %v236_v36  ;;  %v263_v41 = vrot.slane %v262_v38, 1 }
 0x125   :  { %v291_v44 = vsel %vm290_vm10, %v274_v39, %v289_v20  ;;  %v264_v47 = vadd.f32 %v263_v41, %v262_v38 }
 0x126   :  { %v293_v46 = vsel %vm292_vm11, %v275_v40, %v291_v44 }
 0x127   :  { %v295_v48 = vsel %vm294_vm12, %v276_v42, %v293_v46  ;;  %v278_v49 = vmul.f32 0.125, %v264_v47 }
 0x128   :  { %v297_v50 = vsel %vm296_vm13, %v277_v45, %v295_v48 }
 0x129   :  { %v299_v52 = vsel %vm298_vm14, %v278_v49, %v297_v50 }
 0x12a   :  { %v301_v53 = vsel %vm300_vm15, %v279_v51, %v299_v52 }
 0x12b   :  { %303 = vst.msk [vmem:[#allocation7] sm:$0xff] %vm62_vm0, %v301_v53 }
 0x12c   :  { %308 = vsyncadd [#allocation4], 96  ;;  %s458_s2 = smov [#allocation7]  }
 0x12d   :  { %s309_s12 = sshll.u32 %s458_s2, 4  ;;  %s310_s12 = int_to_ptr.vmem [resolvable:$true] %s309_s12 }
 0x12e   :  { %s426_s13 = scalar_lea.vmem %s310_s12, 32  ;;  %s430_s14 = scalar_lea.vmem %s310_s12, 128 }
 0x12f   :  { %p427_p2 = scmp.ne.s32.totalorder %s310_s12, %s426_s13  ;;  %p431_p3 = scmp.lt.s32.totalorder %s310_s12, %s310_s12 }
 0x130   :  { %p432_p4 = scmp.lt.s32.totalorder %s430_s14, %s426_s13 }
 0x132   :  { %p433_p5 = por %p432_p4, %p431_p3 }
 0x134   :  { %p434_p6 = pnand %p433_p5, %p427_p2 }
 0x136   :  { %437 = shalt.err (!%p434_p6)
}
 0x137   :  { %s438_s17 = scalar_lea.hbm %s540_s3, 32 }
 0x138   :  { %p439_p7 = scmp.ne.s32.totalorder %s540_s3, %s438_s17  ;;  %p442_p8 = scmp.lt.u32.totalorder %s438_s17, %s540_s3 }
 0x13a   :  { %p444_p9 = pnand %p442_p8, %p439_p7 }
 0x13c   :  { %447 = shalt.err (!%p444_p9)
}
 0x13d   :  { %s459_s22 = smov 32   ;;  %s460_s23 = smov 2  }
 0x13e   :  { %315 = dma.vmem_to_hbm [thread:$0]  %s310_s12, 32, %s540_s3, [#allocation4], %s459_s22, %s459_s22, %s460_s23  }
 0x13f   :  { %452 = dma.done.wait [#allocation4], 128  }
 0x140   :  { %453 = vsyncadd [#allocation4], 4294967168 }
 0x141   :  { %319 = vsyncpa [#allocation3], 1 }
 0x142   :  { %320 = vsyncpa [#allocation6], 1 }
 0x143   :  { %321 = vsyncpa [#allocation4], 1 }

</bundles_post_ra>
